<compile_context>
chip_gen: v7x
topology: tpu7x:2x2x1
jax: 0.10.0
libtpu: 0.0.40
codegen_flags: <defaults>
</compile_context>

<pallas_src>
import functools

import jax
import jax.numpy as jnp
from jax import lax
from jax.experimental import pallas as pl
from jax.experimental.pallas import tpu as pltpu


# ---------------------------------------------------------------------------
# Kernel
# ---------------------------------------------------------------------------
def _cru_kernel(x_ref, wsq1_ref, wy1_ref, b_ref, wy2_ref, mask_ref, o_ref, *,
                W, HW, nb):
    """One grid step = nb images stacked along the lane axis (C, nb*HW)."""

    def mm(a, b):
        return jnp.dot(a, b, preferred_element_type=jnp.float32)

    x = x_ref[...]                               # (C, L) bf16
    L = x.shape[1]

    # squeeze1 on the upper channel split (split folded into zero columns).
    up_s = mm(wsq1_ref[...], x)                  # (S_pad, L) f32

    # im2col of the 3x3, pad=1 grouped conv: 9 lane-rolled, masked copies.
    # Rolls may cross image / row boundaries; the host-built masks zero every
    # out-of-image tap, so cross-image contamination is impossible.
    masks = mask_ref[...]                        # (9, L) f32 in {0, 1}
    pieces = []
    t = 0
    for dy in (-1, 0, 1):
        for dx in (-1, 0, 1):
            d = dy * W + dx
            if d == 0:
                pieces.append(up_s)              # centre tap: no shift, all valid
            else:
                rolled = pltpu.roll(up_s, shift=(-d) % L, axis=1)
                pieces.append(rolled * masks[t:t + 1, :])
            t += 1
    # 9 aligned 8-row f32 pieces -> one (9*S_pad, L) operand, one bf16 cast.
    stacked = jnp.concatenate(pieces, axis=0).astype(wy1_ref.dtype)

    # Y1 = GWC + PWC1 (+ bias); PWC1 was folded into the centre-tap columns.
    y1 = mm(wy1_ref[...], stacked) + b_ref[...]  # (C, L) f32
    # Y2 = concat([PWC2(squeeze2(low)), squeeze2(low)]) as one composed matmul.
    y2 = mm(wy2_ref[...], x)                     # (C, L) f32

    # Per-image adaptive avg-pool + joint softmax over the 2C pooled channels,
    # then out1 + out2.  nb is a Python int -> static per-image lane slices.
    outs = []
    for j in range(nb):
        sl = slice(j * HW, (j + 1) * HW)
        y1j = y1[:, sl]
        y2j = y2[:, sl]
        p1 = jnp.mean(y1j, axis=1, keepdims=True)        # (C, 1)
        p2 = jnp.mean(y2j, axis=1, keepdims=True)        # (C, 1)
        m = jnp.maximum(jnp.max(p1, keepdims=True), jnp.max(p2, keepdims=True))
        e1 = jnp.exp(p1 - m)
        e2 = jnp.exp(p2 - m)
        inv = 1.0 / (jnp.sum(e1, keepdims=True) + jnp.sum(e2, keepdims=True))
        outs.append(y1j * (e1 * inv) + y2j * (e2 * inv))
    o_ref[...] = jnp.concatenate(outs, axis=1) if nb > 1 else outs[0]


# ---------------------------------------------------------------------------
# Host-side helpers
# ---------------------------------------------------------------------------
def _tap_masks(H, W, nb):
    """(9, nb*H*W) {0,1} masks: tap (dy,dx) valid iff it stays inside the image."""
    hh, ww = jnp.meshgrid(jnp.arange(H), jnp.arange(W), indexing="ij")
    hh = hh.reshape(-1)
    ww = ww.reshape(-1)
    rows = []
    for dy in (-1, 0, 1):
        for dx in (-1, 0, 1):
            ok = ((hh + dy >= 0) & (hh + dy < H) &
                  (ww + dx >= 0) & (ww + dx < W))
            rows.append(ok)
    m = jnp.stack(rows, axis=0).astype(jnp.float32)      # (9, HW)
    return jnp.tile(m, (1, nb))                          # (9, nb*HW)


def _pick_nb(N, HW):
    """Images per grid step: keep >=2 steps when possible, 128-multiple lanes."""
    best = None
    for cand in range(1, N + 1):
        if N % cand:
            continue
        L = cand * HW
        if L % 128 != 0 or L > 4096:
            continue
        if N >= 2 and N // cand < 2:
            continue
        best = cand
    if best is None:
        best = N          # whole batch in one step: block == full array (legal)
    return best


def cru_pallas(x_nchw, kparams, *, nb=None):
    w_sq1f, w_y1, b_gwc, w_y2f = kparams
    N, C, H, W = x_nchw.shape
    HW = H * W
    if nb is None:
        nb = _pick_nb(N, HW)
    assert N % nb == 0
    L = nb * HW
    grid_len = N // nb
    # BlockSpec legality: lane block must be a 128-multiple or the full extent.
    assert L % 128 == 0 or L == N * HW, (L, N * HW)

    # (N, C, HW) -> (C, N*HW): HW stays contiguous (cheap major-axis permute).
    x2 = jnp.transpose(x_nchw.astype(w_sq1f.dtype).reshape(N, C, HW),
                       (1, 0, 2)).reshape(C, N * HW)

    masks = _tap_masks(H, W, nb)                         # (9, L) f32

    kernel = functools.partial(_cru_kernel, W=W, HW=HW, nb=nb)

    out = pl.pallas_call(
        kernel,
        out_shape=jax.ShapeDtypeStruct((C, N * HW), jnp.float32),
        grid_spec=pltpu.PrefetchScalarGridSpec(
            num_scalar_prefetch=0,
            grid=(grid_len,),
            in_specs=[
                pl.BlockSpec((C, L), lambda i: (0, i)),
                pl.BlockSpec(w_sq1f.shape, lambda i: (0, 0)),
                pl.BlockSpec(w_y1.shape, lambda i: (0, 0)),
                pl.BlockSpec(b_gwc.shape, lambda i: (0, 0)),
                pl.BlockSpec(w_y2f.shape, lambda i: (0, 0)),
                pl.BlockSpec(masks.shape, lambda i: (0, 0)),
            ],
            out_specs=pl.BlockSpec((C, L), lambda i: (0, i)),
        ),
        compiler_params=pltpu.CompilerParams(
            dimension_semantics=("parallel",)),
    )(x2, w_sq1f, w_y1, b_gwc, w_y2f, masks)

    out = jnp.transpose(out.reshape(C, N, HW), (1, 0, 2)).reshape(N, C, H, W)
    return out


def make_params(key, op_channel, alpha=0.5, squeeze_radio=2, group_size=2,
                group_kernel_size=3, mm_dtype=jnp.bfloat16):
    C = op_channel
    up = int(alpha * C)
    low = C - up
    up_s = up // squeeze_radio
    low_s = low // squeeze_radio
    assert group_size == 2 and group_kernel_size == 3
    assert up_s % group_size == 0 and C % group_size == 0

    ks = jax.random.split(key, 6)
    scale = 0.2
    # PyTorch-style weights (OIHW; 1x1 kernels collapsed to (O, I)).
    w_sq1 = jax.random.normal(ks[0], (up_s, up), jnp.float32) * scale
    w_sq2 = jax.random.normal(ks[1], (low_s, low), jnp.float32) * scale
    w_gwc = jax.random.normal(ks[2], (C, up_s // group_size, 3, 3), jnp.float32) * scale
    b_gwc = jax.random.normal(ks[3], (C,), jnp.float32) * scale
    w_pwc1 = jax.random.normal(ks[4], (C, up_s), jnp.float32) * scale
    w_pwc2 = jax.random.normal(ks[5], (C - low_s, low_s), jnp.float32) * scale

    raw = dict(w_sq1=w_sq1, w_sq2=w_sq2, w_gwc=w_gwc, b_gwc=b_gwc,
               w_pwc1=w_pwc1, w_pwc2=w_pwc2, up=up, low=low, groups=group_size)

    # ---- host-side precompose / repack for the kernel ----
    SUB = 8
    s_pad = ((up_s + SUB - 1) // SUB) * SUB              # sublane-aligned squeeze out
    in_g = up_s // group_size
    out_g = C // group_size

    # squeeze1 applied to the FULL channel stack (low columns zeroed), padded rows.
    w_sq1f = jnp.zeros((s_pad, C), jnp.float32).at[:up_s, :up].set(w_sq1)

    # Fused Y1 weight (C, 9*s_pad): column block t <-> tap (dy,dx)=(t//3-1, t%3-1);
    # grouped GWC weights in their group's input columns; PWC1 folded into the
    # centre tap (its im2col rows are exactly up_s, unshifted / unmasked).
    wy1 = jnp.zeros((C, 9, s_pad), jnp.float32)
    for g in range(group_size):
        o0, c0 = g * out_g, g * in_g
        blk = w_gwc[o0:o0 + out_g]                       # (out_g, in_g, 3, 3)
        blk = jnp.transpose(blk, (0, 2, 3, 1)).reshape(out_g, 9, in_g)
        wy1 = wy1.at[o0:o0 + out_g, :, c0:c0 + in_g].set(blk)
    wy1 = wy1.at[:, 4, :up_s].add(w_pwc1)
    w_y1 = wy1.reshape(C, 9 * s_pad)

    # Composed low branch: Y2 = concat([PWC2@SQ2, SQ2]) @ low, with the up
    # columns zeroed so it can be applied to the full input (no channel split).
    w_y2 = jnp.concatenate([w_pwc2 @ w_sq2, w_sq2], axis=0)     # (C, low)
    w_y2f = jnp.zeros((C, C), jnp.float32).at[:, up:].set(w_y2)

    kparams = (
        w_sq1f.astype(mm_dtype),           # (s_pad, C)
        w_y1.astype(mm_dtype),             # (C, 9*s_pad)
        b_gwc.reshape(C, 1),               # (C, 1) f32, added in f32
        w_y2f.astype(mm_dtype),            # (C, C)
    )
    return raw, kparams


def cru_reference(x_nchw, p):
    """Pure-JAX reference matching the PyTorch forward exactly (f32)."""
    x = jnp.transpose(x_nchw, (0, 2, 3, 1)).astype(jnp.float32)   # NHWC
    up = x[..., :p['up']]
    low = x[..., p['up']:]
    up_s = jnp.einsum('nhwc,oc->nhwo', up, p['w_sq1'])
    low_s = jnp.einsum('nhwc,oc->nhwo', low, p['w_sq2'])
    w_hwio = jnp.transpose(p['w_gwc'], (2, 3, 1, 0))              # (3,3,in/g,out)
    gwc = lax.conv_general_dilated(
        up_s, w_hwio, window_strides=(1, 1), padding='SAME',
        dimension_numbers=('NHWC', 'HWIO', 'NHWC'),
        feature_group_count=p['groups']) + p['b_gwc']
    pwc1 = jnp.einsum('nhwc,oc->nhwo', up_s, p['w_pwc1'])
    Y1 = gwc + pwc1
    Y2 = jnp.concatenate([jnp.einsum('nhwc,oc->nhwo', low_s, p['w_pwc2']), low_s],
                         axis=-1)
    out = jnp.concatenate([Y1, Y2], axis=-1)
    pooled = jnp.mean(out, axis=(1, 2), keepdims=True)
    out = out * jax.nn.softmax(pooled, axis=-1)
    C = Y1.shape[-1]
    res = out[..., :C] + out[..., C:]
    return jnp.transpose(res, (0, 3, 1, 2))


if __name__ == "__main__":
    key = jax.random.PRNGKey(0)
    k_x, k_p = jax.random.split(key)

    # op_channel=16 (divisible by 2*squeeze*groups); HW=256 -> 128-multiple lanes.
    N, C, H, W = 4, 16, 16, 16
    x_nchw = jax.random.normal(k_x, (N, C, H, W), jnp.float32)

    raw_params, kernel_params = make_params(k_p, C)

    out = cru_pallas(x_nchw, kernel_params, nb=2)   # 2 images / step, grid=2
    out = jax.block_until_ready(out)

    ref = cru_reference(x_nchw, raw_params)
    assert out.shape == ref.shape == (N, C, H, W)
    err = float(jnp.max(jnp.abs(out - ref)))
    # bf16 MXU operands / bf16 input DMA => allow ~1e-2 absolute slack.
    assert jnp.allclose(out, ref, atol=1e-2, rtol=1e-2), f"max abs diff = {err}"

    print("KERNEL_OK")
</pallas_src>

<mosaic_0001>
module attributes {stable_mosaic.version = 11 : i64} {
  func.func @_cru_kernel(%arg0: i32, %arg1: memref<16x512xbf16, #tpu.memory_space<vmem>>, %arg2: memref<8x16xbf16, #tpu.memory_space<vmem>>, %arg3: memref<16x72xbf16, #tpu.memory_space<vmem>>, %arg4: memref<16x1xf32, #tpu.memory_space<vmem>>, %arg5: memref<16x16xbf16, #tpu.memory_space<vmem>>, %arg6: memref<9x512xf32, #tpu.memory_space<vmem>>, %arg7: memref<16x512xf32, #tpu.memory_space<vmem>>) attributes {dimension_semantics = [#tpu.dimension_semantics<parallel>], iteration_bounds = array<i64: 2>, scalar_prefetch = 0 : i64, scratch_operands = 0 : i64, tpu.core_type = #tpu.core_type<tc>, window_params = [{transform_indices = @transform_0, window_bounds = array<i64: 16, 512>}, {pipeline_mode = #tpu.pipeline_mode<synchronous>, transform_indices = @transform_1, window_bounds = array<i64: 8, 16>}, {pipeline_mode = #tpu.pipeline_mode<synchronous>, transform_indices = @transform_2, window_bounds = array<i64: 16, 72>}, {pipeline_mode = #tpu.pipeline_mode<synchronous>, transform_indices = @transform_3, window_bounds = array<i64: 16, 1>}, {pipeline_mode = #tpu.pipeline_mode<synchronous>, transform_indices = @transform_4, window_bounds = array<i64: 16, 16>}, {pipeline_mode = #tpu.pipeline_mode<synchronous>, transform_indices = @transform_5, window_bounds = array<i64: 9, 512>}, {transform_indices = @transform_6, window_bounds = array<i64: 16, 512>}]} {
    %c0 = arith.constant 0 : index
    %c0_0 = arith.constant 0 : index
    %0 = vector.load %arg1[%c0, %c0_0] : memref<16x512xbf16, #tpu.memory_space<vmem>>, vector<16x512xbf16>
    %c0_1 = arith.constant 0 : index
    %c0_2 = arith.constant 0 : index
    %1 = vector.load %arg2[%c0_1, %c0_2] : memref<8x16xbf16, #tpu.memory_space<vmem>>, vector<8x16xbf16>
    %cst = arith.constant dense<0.000000e+00> : vector<8x512xf32>
    %2 = tpu.matmul %1, %0, %cst {dimension_numbers = #tpu.dot_dimension_numbers<[1], [0], [0], [1], [0, 0, 1, 1], [], []>} : vector<8x16xbf16>, vector<16x512xbf16>, vector<8x512xf32> -> vector<8x512xf32>
    %c0_3 = arith.constant 0 : index
    %c0_4 = arith.constant 0 : index
    %3 = vector.load %arg6[%c0_3, %c0_4] : memref<9x512xf32, #tpu.memory_space<vmem>>, vector<9x512xf32>
    %c17_i32 = arith.constant 17 : i32
    %4 = tpu.dynamic_rotate %2 by %c17_i32 dim 1 : vector<8x512xf32>, i32 -> vector<8x512xf32>
    %5 = vector.extract_strided_slice %3 {offsets = [0, 0], sizes = [1, 512], strides = [1, 1]} : vector<9x512xf32> to vector<1x512xf32>
    %6 = vector.broadcast %5 : vector<1x512xf32> to vector<8x512xf32>
    %7 = arith.mulf %4, %6 : vector<8x512xf32>
    %c16_i32 = arith.constant 16 : i32
    %8 = tpu.dynamic_rotate %2 by %c16_i32 dim 1 : vector<8x512xf32>, i32 -> vector<8x512xf32>
    %9 = vector.extract_strided_slice %3 {offsets = [1, 0], sizes = [1, 512], strides = [1, 1]} : vector<9x512xf32> to vector<1x512xf32>
    %10 = vector.broadcast %9 : vector<1x512xf32> to vector<8x512xf32>
    %11 = arith.mulf %8, %10 : vector<8x512xf32>
    %c15_i32 = arith.constant 15 : i32
    %12 = tpu.dynamic_rotate %2 by %c15_i32 dim 1 : vector<8x512xf32>, i32 -> vector<8x512xf32>
    %13 = vector.extract_strided_slice %3 {offsets = [2, 0], sizes = [1, 512], strides = [1, 1]} : vector<9x512xf32> to vector<1x512xf32>
    %14 = vector.broadcast %13 : vector<1x512xf32> to vector<8x512xf32>
    %15 = arith.mulf %12, %14 : vector<8x512xf32>
    %c1_i32 = arith.constant 1 : i32
    %16 = tpu.dynamic_rotate %2 by %c1_i32 dim 1 : vector<8x512xf32>, i32 -> vector<8x512xf32>
    %17 = vector.extract_strided_slice %3 {offsets = [3, 0], sizes = [1, 512], strides = [1, 1]} : vector<9x512xf32> to vector<1x512xf32>
    %18 = vector.broadcast %17 : vector<1x512xf32> to vector<8x512xf32>
    %19 = arith.mulf %16, %18 : vector<8x512xf32>
    %c511_i32 = arith.constant 511 : i32
    %20 = tpu.dynamic_rotate %2 by %c511_i32 dim 1 : vector<8x512xf32>, i32 -> vector<8x512xf32>
    %21 = vector.extract_strided_slice %3 {offsets = [5, 0], sizes = [1, 512], strides = [1, 1]} : vector<9x512xf32> to vector<1x512xf32>
    %22 = vector.broadcast %21 : vector<1x512xf32> to vector<8x512xf32>
    %23 = arith.mulf %20, %22 : vector<8x512xf32>
    %c497_i32 = arith.constant 497 : i32
    %24 = tpu.dynamic_rotate %2 by %c497_i32 dim 1 : vector<8x512xf32>, i32 -> vector<8x512xf32>
    %25 = vector.extract_strided_slice %3 {offsets = [6, 0], sizes = [1, 512], strides = [1, 1]} : vector<9x512xf32> to vector<1x512xf32>
    %26 = vector.broadcast %25 : vector<1x512xf32> to vector<8x512xf32>
    %27 = arith.mulf %24, %26 : vector<8x512xf32>
    %c496_i32 = arith.constant 496 : i32
    %28 = tpu.dynamic_rotate %2 by %c496_i32 dim 1 : vector<8x512xf32>, i32 -> vector<8x512xf32>
    %29 = vector.extract_strided_slice %3 {offsets = [7, 0], sizes = [1, 512], strides = [1, 1]} : vector<9x512xf32> to vector<1x512xf32>
    %30 = vector.broadcast %29 : vector<1x512xf32> to vector<8x512xf32>
    %31 = arith.mulf %28, %30 : vector<8x512xf32>
    %c495_i32 = arith.constant 495 : i32
    %32 = tpu.dynamic_rotate %2 by %c495_i32 dim 1 : vector<8x512xf32>, i32 -> vector<8x512xf32>
    %33 = vector.extract_strided_slice %3 {offsets = [8, 0], sizes = [1, 512], strides = [1, 1]} : vector<9x512xf32> to vector<1x512xf32>
    %34 = vector.broadcast %33 : vector<1x512xf32> to vector<8x512xf32>
    %35 = arith.mulf %32, %34 : vector<8x512xf32>
    %36 = tpu.concatenate %7, %11, %15, %19, %2, %23, %27, %31, %35 in 0 : vector<8x512xf32>, vector<8x512xf32>, vector<8x512xf32>, vector<8x512xf32>, vector<8x512xf32>, vector<8x512xf32>, vector<8x512xf32>, vector<8x512xf32>, vector<8x512xf32> -> vector<72x512xf32>
    %37 = arith.truncf %36 : vector<72x512xf32> to vector<72x512xbf16>
    %c0_5 = arith.constant 0 : index
    %c0_6 = arith.constant 0 : index
    %38 = vector.load %arg3[%c0_5, %c0_6] : memref<16x72xbf16, #tpu.memory_space<vmem>>, vector<16x72xbf16>
    %cst_7 = arith.constant dense<0.000000e+00> : vector<16x512xf32>
    %39 = tpu.matmul %38, %37, %cst_7 {dimension_numbers = #tpu.dot_dimension_numbers<[1], [0], [0], [1], [0, 0, 1, 1], [], []>} : vector<16x72xbf16>, vector<72x512xbf16>, vector<16x512xf32> -> vector<16x512xf32>
    %c0_8 = arith.constant 0 : index
    %c0_9 = arith.constant 0 : index
    %40 = vector.load %arg4[%c0_8, %c0_9] : memref<16x1xf32, #tpu.memory_space<vmem>>, vector<16x1xf32>
    %41 = vector.broadcast %40 : vector<16x1xf32> to vector<16x512xf32>
    %42 = arith.addf %39, %41 : vector<16x512xf32>
    %c0_10 = arith.constant 0 : index
    %c0_11 = arith.constant 0 : index
    %43 = vector.load %arg5[%c0_10, %c0_11] : memref<16x16xbf16, #tpu.memory_space<vmem>>, vector<16x16xbf16>
    %cst_12 = arith.constant dense<0.000000e+00> : vector<16x512xf32>
    %44 = tpu.matmul %43, %0, %cst_12 {dimension_numbers = #tpu.dot_dimension_numbers<[1], [0], [0], [1], [0, 0, 1, 1], [], []>} : vector<16x16xbf16>, vector<16x512xbf16>, vector<16x512xf32> -> vector<16x512xf32>
    %45 = vector.extract_strided_slice %42 {offsets = [0, 0], sizes = [16, 256], strides = [1, 1]} : vector<16x512xf32> to vector<16x256xf32>
    %46 = vector.extract_strided_slice %44 {offsets = [0, 0], sizes = [16, 256], strides = [1, 1]} : vector<16x512xf32> to vector<16x256xf32>
    %cst_13 = arith.constant dense<0.000000e+00> : vector<16xf32>
    %47 = vector.multi_reduction <add>, %45, %cst_13 [1] : vector<16x256xf32> to vector<16xf32>
    %48 = vector.shape_cast %47 : vector<16xf32> to vector<16x1xf32>
    %cst_14 = arith.constant 2.560000e+02 : f32
    %49 = vector.broadcast %cst_14 : f32 to vector<16x1xf32>
    %50 = arith.divf %48, %49 : vector<16x1xf32>
    %cst_15 = arith.constant dense<0.000000e+00> : vector<16xf32>
    %51 = vector.multi_reduction <add>, %46, %cst_15 [1] : vector<16x256xf32> to vector<16xf32>
    %52 = vector.shape_cast %51 : vector<16xf32> to vector<16x1xf32>
    %cst_16 = arith.constant 2.560000e+02 : f32
    %53 = vector.broadcast %cst_16 : f32 to vector<16x1xf32>
    %54 = arith.divf %52, %53 : vector<16x1xf32>
    %55 = vector.shape_cast %50 : vector<16x1xf32> to vector<1x16x1xf32>
    %cst_17 = arith.constant dense<0xFF800000> : vector<1xf32>
    %56 = vector.multi_reduction <maximumf>, %55, %cst_17 [1, 2] : vector<1x16x1xf32> to vector<1xf32>
    %57 = vector.shape_cast %56 : vector<1xf32> to vector<1x1x1xf32>
    %58 = vector.extract %57[0, 0, 0] : f32 from vector<1x1x1xf32>
    %59 = vector.broadcast %58 : f32 to vector<1x1xf32>
    %60 = vector.shape_cast %54 : vector<16x1xf32> to vector<1x16x1xf32>
    %cst_18 = arith.constant dense<0xFF800000> : vector<1xf32>
    %61 = vector.multi_reduction <maximumf>, %60, %cst_18 [1, 2] : vector<1x16x1xf32> to vector<1xf32>
    %62 = vector.shape_cast %61 : vector<1xf32> to vector<1x1x1xf32>
    %63 = vector.extract %62[0, 0, 0] : f32 from vector<1x1x1xf32>
    %64 = vector.broadcast %63 : f32 to vector<1x1xf32>
    %65 = arith.maximumf %59, %64 : vector<1x1xf32>
    %66 = vector.broadcast %65 : vector<1x1xf32> to vector<16x1xf32>
    %67 = arith.subf %50, %66 : vector<16x1xf32>
    %68 = math.exp %67 : vector<16x1xf32>
    %69 = vector.broadcast %65 : vector<1x1xf32> to vector<16x1xf32>
    %70 = arith.subf %54, %69 : vector<16x1xf32>
    %71 = math.exp %70 : vector<16x1xf32>
    %72 = vector.shape_cast %68 : vector<16x1xf32> to vector<1x16x1xf32>
    %cst_19 = arith.constant dense<0.000000e+00> : vector<1xf32>
    %73 = vector.multi_reduction <add>, %72, %cst_19 [1, 2] : vector<1x16x1xf32> to vector<1xf32>
    %74 = vector.shape_cast %73 : vector<1xf32> to vector<1x1x1xf32>
    %75 = vector.extract %74[0, 0, 0] : f32 from vector<1x1x1xf32>
    %76 = vector.broadcast %75 : f32 to vector<1x1xf32>
    %77 = vector.shape_cast %71 : vector<16x1xf32> to vector<1x16x1xf32>
    %cst_20 = arith.constant dense<0.000000e+00> : vector<1xf32>
    %78 = vector.multi_reduction <add>, %77, %cst_20 [1, 2] : vector<1x16x1xf32> to vector<1xf32>
    %79 = vector.shape_cast %78 : vector<1xf32> to vector<1x1x1xf32>
    %80 = vector.extract %79[0, 0, 0] : f32 from vector<1x1x1xf32>
    %81 = vector.broadcast %80 : f32 to vector<1x1xf32>
    %82 = arith.addf %76, %81 : vector<1x1xf32>
    %cst_21 = arith.constant 1.000000e+00 : f32
    %83 = vector.broadcast %cst_21 : f32 to vector<1x1xf32>
    %84 = arith.divf %83, %82 : vector<1x1xf32>
    %85 = vector.broadcast %84 : vector<1x1xf32> to vector<16x1xf32>
    %86 = arith.mulf %68, %85 : vector<16x1xf32>
    %87 = vector.broadcast %86 : vector<16x1xf32> to vector<16x256xf32>
    %88 = arith.mulf %45, %87 : vector<16x256xf32>
    %89 = vector.broadcast %84 : vector<1x1xf32> to vector<16x1xf32>
    %90 = arith.mulf %71, %89 : vector<16x1xf32>
    %91 = vector.broadcast %90 : vector<16x1xf32> to vector<16x256xf32>
    %92 = arith.mulf %46, %91 : vector<16x256xf32>
    %93 = arith.addf %88, %92 : vector<16x256xf32>
    %94 = vector.extract_strided_slice %42 {offsets = [0, 256], sizes = [16, 256], strides = [1, 1]} : vector<16x512xf32> to vector<16x256xf32>
    %95 = vector.extract_strided_slice %44 {offsets = [0, 256], sizes = [16, 256], strides = [1, 1]} : vector<16x512xf32> to vector<16x256xf32>
    %cst_22 = arith.constant dense<0.000000e+00> : vector<16xf32>
    %96 = vector.multi_reduction <add>, %94, %cst_22 [1] : vector<16x256xf32> to vector<16xf32>
    %97 = vector.shape_cast %96 : vector<16xf32> to vector<16x1xf32>
    %cst_23 = arith.constant 2.560000e+02 : f32
    %98 = vector.broadcast %cst_23 : f32 to vector<16x1xf32>
    %99 = arith.divf %97, %98 : vector<16x1xf32>
    %cst_24 = arith.constant dense<0.000000e+00> : vector<16xf32>
    %100 = vector.multi_reduction <add>, %95, %cst_24 [1] : vector<16x256xf32> to vector<16xf32>
    %101 = vector.shape_cast %100 : vector<16xf32> to vector<16x1xf32>
    %cst_25 = arith.constant 2.560000e+02 : f32
    %102 = vector.broadcast %cst_25 : f32 to vector<16x1xf32>
    %103 = arith.divf %101, %102 : vector<16x1xf32>
    %104 = vector.shape_cast %99 : vector<16x1xf32> to vector<1x16x1xf32>
    %cst_26 = arith.constant dense<0xFF800000> : vector<1xf32>
    %105 = vector.multi_reduction <maximumf>, %104, %cst_26 [1, 2] : vector<1x16x1xf32> to vector<1xf32>
    %106 = vector.shape_cast %105 : vector<1xf32> to vector<1x1x1xf32>
    %107 = vector.extract %106[0, 0, 0] : f32 from vector<1x1x1xf32>
    %108 = vector.broadcast %107 : f32 to vector<1x1xf32>
    %109 = vector.shape_cast %103 : vector<16x1xf32> to vector<1x16x1xf32>
    %cst_27 = arith.constant dense<0xFF800000> : vector<1xf32>
    %110 = vector.multi_reduction <maximumf>, %109, %cst_27 [1, 2] : vector<1x16x1xf32> to vector<1xf32>
    %111 = vector.shape_cast %110 : vector<1xf32> to vector<1x1x1xf32>
    %112 = vector.extract %111[0, 0, 0] : f32 from vector<1x1x1xf32>
    %113 = vector.broadcast %112 : f32 to vector<1x1xf32>
    %114 = arith.maximumf %108, %113 : vector<1x1xf32>
    %115 = vector.broadcast %114 : vector<1x1xf32> to vector<16x1xf32>
    %116 = arith.subf %99, %115 : vector<16x1xf32>
    %117 = math.exp %116 : vector<16x1xf32>
    %118 = vector.broadcast %114 : vector<1x1xf32> to vector<16x1xf32>
    %119 = arith.subf %103, %118 : vector<16x1xf32>
    %120 = math.exp %119 : vector<16x1xf32>
    %121 = vector.shape_cast %117 : vector<16x1xf32> to vector<1x16x1xf32>
    %cst_28 = arith.constant dense<0.000000e+00> : vector<1xf32>
    %122 = vector.multi_reduction <add>, %121, %cst_28 [1, 2] : vector<1x16x1xf32> to vector<1xf32>
    %123 = vector.shape_cast %122 : vector<1xf32> to vector<1x1x1xf32>
    %124 = vector.extract %123[0, 0, 0] : f32 from vector<1x1x1xf32>
    %125 = vector.broadcast %124 : f32 to vector<1x1xf32>
    %126 = vector.shape_cast %120 : vector<16x1xf32> to vector<1x16x1xf32>
    %cst_29 = arith.constant dense<0.000000e+00> : vector<1xf32>
    %127 = vector.multi_reduction <add>, %126, %cst_29 [1, 2] : vector<1x16x1xf32> to vector<1xf32>
    %128 = vector.shape_cast %127 : vector<1xf32> to vector<1x1x1xf32>
    %129 = vector.extract %128[0, 0, 0] : f32 from vector<1x1x1xf32>
    %130 = vector.broadcast %129 : f32 to vector<1x1xf32>
    %131 = arith.addf %125, %130 : vector<1x1xf32>
    %cst_30 = arith.constant 1.000000e+00 : f32
    %132 = vector.broadcast %cst_30 : f32 to vector<1x1xf32>
    %133 = arith.divf %132, %131 : vector<1x1xf32>
    %134 = vector.broadcast %133 : vector<1x1xf32> to vector<16x1xf32>
    %135 = arith.mulf %117, %134 : vector<16x1xf32>
    %136 = vector.broadcast %135 : vector<16x1xf32> to vector<16x256xf32>
    %137 = arith.mulf %94, %136 : vector<16x256xf32>
    %138 = vector.broadcast %133 : vector<1x1xf32> to vector<16x1xf32>
    %139 = arith.mulf %120, %138 : vector<16x1xf32>
    %140 = vector.broadcast %139 : vector<16x1xf32> to vector<16x256xf32>
    %141 = arith.mulf %95, %140 : vector<16x256xf32>
    %142 = arith.addf %137, %141 : vector<16x256xf32>
    %143 = tpu.concatenate %93, %142 in 1 : vector<16x256xf32>, vector<16x256xf32> -> vector<16x512xf32>
    %c0_31 = arith.constant 0 : index
    %c0_32 = arith.constant 0 : index
    %144 = vector.load %arg7[%c0_31, %c0_32] : memref<16x512xf32, #tpu.memory_space<vmem>>, vector<16x512xf32>
    tpu.vector_store %arg7[%c0_31, %c0_32], %143 {strides = array<i32>} : memref<16x512xf32, #tpu.memory_space<vmem>>, vector<16x512xf32>,
    return
  }
  func.func @transform_0(%arg0: i32) -> (i32, i32) {
    %c0_i32 = arith.constant 0 : i32
    %c0_i32_0 = arith.constant 0 : i32
    return %c0_i32, %arg0 : i32, i32
  }
  func.func @transform_1(%arg0: i32) -> (i32, i32) {
    %c0_i32 = arith.constant 0 : i32
    %c0_i32_0 = arith.constant 0 : i32
    %c0_i32_1 = arith.constant 0 : i32
    return %c0_i32, %c0_i32_0 : i32, i32
  }
  func.func @transform_2(%arg0: i32) -> (i32, i32) {
    %c0_i32 = arith.constant 0 : i32
    %c0_i32_0 = arith.constant 0 : i32
    %c0_i32_1 = arith.constant 0 : i32
    return %c0_i32, %c0_i32_0 : i32, i32
  }
  func.func @transform_3(%arg0: i32) -> (i32, i32) {
    %c0_i32 = arith.constant 0 : i32
    %c0_i32_0 = arith.constant 0 : i32
    %c0_i32_1 = arith.constant 0 : i32
    return %c0_i32, %c0_i32_0 : i32, i32
  }
  func.func @transform_4(%arg0: i32) -> (i32, i32) {
    %c0_i32 = arith.constant 0 : i32
    %c0_i32_0 = arith.constant 0 : i32
    %c0_i32_1 = arith.constant 0 : i32
    return %c0_i32, %c0_i32_0 : i32, i32
  }
  func.func @transform_5(%arg0: i32) -> (i32, i32) {
    %c0_i32 = arith.constant 0 : i32
    %c0_i32_0 = arith.constant 0 : i32
    %c0_i32_1 = arith.constant 0 : i32
    return %c0_i32, %c0_i32_0 : i32, i32
  }
  func.func @transform_6(%arg0: i32) -> (i32, i32) {
    %c0_i32 = arith.constant 0 : i32
    %c0_i32_0 = arith.constant 0 : i32
    return %c0_i32, %arg0 : i32, i32
  }
}

</mosaic_0001>

<bundles_post_ra>
// kernel: tpu_custom_call.1
= control target key start
LH: loop header
LB: loop body
LE: loop exit
PB: predicated region body
PF: predicated region fallthrough
CT: control target
= control target key end

     0   :  { %11 = vsyncpa [#allocation3], 0  ;;  %s2169_s0 = inlined_call_operand.hbm [shape: bf16[16,1024], index: 0, kind: input, shape index: {}]   ;;  %s2170_s1 = inlined_call_operand.vmem [shape: bf16[8,16], index: 1, kind: input, shape index: {}]   ;;  %s2171_s2 = inlined_call_operand.vmem [shape: bf16[16,72], index: 2, kind: input, shape index: {}]   ;;  %s2172_s3 = inlined_call_operand.vmem [shape: f32[16,1], index: 3, kind: input, shape index: {}]   ;;  %s2173_s4 = inlined_call_operand.vmem [shape: bf16[16,16], index: 4, kind: input, shape index: {}]   ;;  %s2174_s5 = inlined_call_operand.hbm [shape: f32[9,512], index: 5, kind: input, shape index: {}]   ;;  %s2175_s6 = inlined_call_operand.hbm [shape: f32[16,1024], index: 6, kind: output, shape index: {}]  }
   0x1   :  { %13 = vsyncpa [#allocation3 + $0x1], 0 }
   0x2   :  { %14 = vsyncpa [#allocation6], 0 }
   0x3   :  { %15 = vsyncpa [#allocation4], 0 }
   0x4   :  { %17 = vsyncpa [#allocation4 + $0x1], 0  ;;  %s1541_s21 = smov 0   ;;  %s1543_s22 = smov 0  }
   0x5   :  { %s1545_s23 = smov 0   ;;  %s1547_s24 = smov 0  }
   0x6 LB: > { %s1562_s25 = sadd.s32 4294967295, %s1485_s24   ;;  %s1202_s26 = sadd.s32 4294967294, %s1485_s24   ;;  %s1485_s24 = sphi %s1547_s24, %s2201_s24   ;;  %s1481_s23 = sphi %s1545_s23, %s2200_s23   ;;  %s1477_s22 = sphi %s1543_s22, %s2199_s22   ;;  %s1473_s21 = sphi %s1541_s21, %s2198_s21  }
   0x7   : > { %s1566_s27 = sadd.s32 1, %s1485_s24   ;;  %s30_s28 = sadd.s32 1, %s1481_s23 }
   0x8   : > { %s27_s29 = ssub.s32 %s1485_s24, %s1566_s27  ;;  %p37_p0 = scmp.ne.s32.totalorder %s1481_s23, %s1477_s22 }
   0x9   : > { %p28_p1 = scmp.eq.s32.totalorder %s27_s29, 0  ;;  %p38_p2 = scmp.eq.s32.totalorder %s1485_s24, 0 }
   0xa   : > { %p43_p3 = scmp.ne.s32.totalorder %s1477_s22, %s1473_s21  ;;  %p2176_p4 = scmp.eq.s32.totalorder %s1562_s25, 0 }
   0xb   : > { %s1578_s30 = scalar_select %p28_p1, %s1481_s23, %s30_s28  }
   0xc   : > { %p1580_p5 = por %p38_p2, %p37_p0  ;;  %p1586_p6 = por %p2176_p4, %p43_p3 }
   0xd   : > { %p172_p7 = scmp.eq.s32.totalorder %s1562_s25, 1  ;;  %p178_p8 = scmp.eq.s32.totalorder %s1202_s26, 1 }
   0xe   : > { %s2181_s7 = scalar_select %p1580_p5, 1, 0 }
   0xf   : > { %s2182_s8 = scalar_select %p1586_p6, 1, 0 }
  0x10   : > { %p1203_p9 = scmp.ge.s32.totalorder %s1485_s24, 1  ;;  %p185_p10 = scmp.lt.s32.totalorder %s1485_s24, 3 }
  0x11   : > { %p1593_p11 = por %p172_p7, %p37_p0  ;;  %p1597_p12 = por %p178_p8, %p43_p3 }
  0x12   : > { %p1601_p13 = pnand %p1203_p9, %p185_p10  ;;  %s1487_s12 = smov [#allocation5]  }
  0x13   : > { %s2183_s9 = scalar_select %p1593_p11, 1, 0 }
  0x14   : > { %s2184_s10 = scalar_select %p1597_p12, 1, 0 }
  0x15   : > { %s2185_s11 = scalar_select %p1601_p13, 1, 0 }
  0x16   : > { %p1262_p1 = pneg %p1601_p13  ;;  %s209_s13 = sshll.u32 %s1487_s12, 4  ;;  %s210_s13 = int_to_ptr.vmem [resolvable:$true] %s209_s13 }
  0x17   : > { %s223_s15 = sand.u32 1, %s1481_s23   ;;  %s1357_s18 = scalar_lea.hbm %s2174_s5, 1024 }
  0x18   : > { %p1609_p2 = pnand %p1262_p1, %p2176_p4  ;;  %p1358_p7 = scmp.ne.s32.totalorder %s2174_s5, %s1357_s18 }
  0x19   : > { %p1364_p1 = scmp.lt.u32.totalorder %s1357_s18, %s2174_s5 }
  0x1a   : > { %p1359_p8 = pneg %p1609_p2 }
  0x1c   : > { %p1360_p9 = pnand %p1359_p8, %p1358_p7 }
  0x1e   : > { %p1361_p10 = pneg %p1360_p9 }
  0x20   : > { %p1366_p4 = pnand %p1364_p1, %p1361_p10 }
  0x22   : > { %1369 = shalt.err (!%p1366_p4)
}
  0x23   : > { %s1370_s29 = scalar_lea.vmem %s210_s13, 1024  ;;  %p1378_p11 = scmp.lt.s32.totalorder %s210_s13, %s210_s13 }
  0x24   : > { %p1371_p0 = scmp.ne.s32.totalorder %s210_s13, %s1370_s29  ;;  %p1379_p6 = scmp.lt.s32.totalorder %s1370_s29, %s1370_s29 }
  0x26   : > { %p1373_p3 = pnand %p1371_p0, %p1359_p8  ;;  %p1380_p13 = por %p1379_p6, %p1378_p11 }
  0x28   : > { %p1374_p12 = pneg %p1373_p3 }
  0x2a   : > { %p1381_p5 = pnand %p1380_p13, %p1374_p12 }
  0x2c   : > { %1384 = shalt.err (!%p1381_p5)
}
  0x2d   : > { %s2180_s12 = smov 512   ;;  %s1489_s16 = smov 32  }
  0x2e   : > { %1265 = dma.hbm_to_vmem [thread:$0]  (!%p1609_p2), %s2174_s5, 1024, %s210_s13, [#allocation6], %s2180_s12, %s2180_s12, %s1489_s16  }
  0x2f   : > { %p2187_p4 = scmp.ne.s32.totalorder %s2181_s7, 0  ;;  %p2188_p0 = scmp.lt.s32.totalorder %s1485_s24, 2 }
  0x30   : > { %s1206_s20 = sshll.u32 %s223_s15, 5  ;;  %s1236_s26 = sshll.u32 %s1485_s24, 8 }
  0x31   : > { %p1638_p3 = pnand %p2188_p0, %p2187_p4  ;;  %s1646_s14 = scalar_lea.hbm %s2169_s0, %s1236_s26 }
  0x32   : > { %s227_s13 = scalar_lea.vmem [#allocation2], %s1206_s20  ;;  %s1650_s16 = scalar_lea.sflag [#allocation3], %s223_s15 }
  0x33   : > { %s234_s7 = sshll.u32 %s227_s13, 4  ;;  %s1385_s17 = scalar_lea.hbm %s1646_s14, 512  ;;  %s1648_s7 = int_to_ptr.vmem [resolvable:$true] %s234_s7 }
  0x34   : > { %p1386_p5 = scmp.ne.s32.totalorder %s1646_s14, %s1385_s17  ;;  %p1387_p6 = pneg %p1638_p3 }
  0x35   : > { %s1390_s28 = scalar_lea.hbm %s2169_s0, 1024  ;;  %p1391_p13 = scmp.lt.u32.totalorder %s1646_s14, %s2169_s0 }
  0x36   : > { %p1388_p11 = pnand %p1387_p6, %p1386_p5  ;;  %p1392_p2 = scmp.lt.u32.totalorder %s1390_s28, %s1385_s17 }
  0x37   : > { %p1394_p8 = scmp.lt.u32.totalorder %s1385_s17, %s1646_s14 }
  0x38   : > { %p1389_p12 = pneg %p1388_p11  ;;  %p1393_p7 = por %p1392_p2, %p1391_p13 }
  0x3a   : > { %p1395_p9 = por %p1394_p8, %p1393_p7 }
  0x3c   : > { %p1396_p10 = pnand %p1395_p9, %p1389_p12 }
  0x3e   : > { %1399 = shalt.err (!%p1396_p10)
}
  0x3f   : > { %s1400_s15 = scalar_lea.vmem %s1648_s7, 512  ;;  %s1490_s20 = smov [#allocation2]  }
  0x40   : > { %p1401_p1 = scmp.ne.s32.totalorder %s1648_s7, %s1400_s15  ;;  %s1405_s13 = sshll.u32 %s1490_s20, 4  ;;  %s1406_s13 = int_to_ptr.vmem [resolvable:$false] %s1405_s13 }
  0x41   : > { %s1407_s12 = scalar_lea.vmem %s1406_s13, 1024  ;;  %p1408_p5 = scmp.lt.s32.totalorder %s1648_s7, %s1406_s13 }
  0x42   : > { %p1403_p4 = pnand %p1401_p1, %p1387_p6  ;;  %p1409_p11 = scmp.lt.s32.totalorder %s1407_s12, %s1400_s15 }
  0x44   : > { %p1404_p0 = pneg %p1403_p4  ;;  %p1410_p13 = por %p1409_p11, %p1408_p5 }
  0x46   : > { %p1411_p2 = pnand %p1410_p13, %p1404_p0 }
  0x48   : > { %1414 = shalt.err (!%p1411_p2)
}
  0x49   : > { %s1491_s17 = smov 256   ;;  %s1492_s18 = smov 16  }
  0x4a   : > { %s2190_s26 = smov 512   ;;  %p2191_p6 = scmp.ne.s32.totalorder %s2185_s11, 0 }
  0x4b   : > { %1269 = dma.hbm_to_vmem [thread:$0]  (!%p1638_p3), %s1646_s14, 512, %s1648_s7, %s1650_s16, %s2190_s26, %s1491_s17, %s1492_s18  }
  0x4c   : > { %246 = sbr.rel (%p2191_p6) target bundleno = 1404 (0x57c), region = 44  ;;  %s1682_s28 = sand.u32 (!%p2191_p6), 1, %s1477_s22  }
  0x4d   : > { %s1210_s29 = sshll.u32 (!%p2191_p6), %s1682_s28, 5  ;;  %s249_s15 = scalar_lea.sflag (!%p2191_p6), [#allocation3], %s1682_s28 }
  0x4e   : > { %s252_s20 = scalar_lea.vmem (!%p2191_p6), [#allocation2], %s1210_s29  ;;  %p2192_p12 = scmp.ne.s32.totalorder (!%p2191_p6), %s2182_s8, 0 }
  0x53   : > { %1460 = dma.done.wait (%p2192_p12), %s249_s15, 512  }
  0x54   : > { %1462 = vsyncadd (%p2192_p12), %s249_s15, 4294966784  ;;  %p2193_p7 = scmp.eq.s32.totalorder %s1562_s25, 0 }
  0x56   : > { %1464 = dma.done.wait (%p2193_p7), [#allocation6], 1024   ;;  %p2194_p3 = pmov %p2193_p7 }
  0x57   : > { %v1493_v0 = vmov 0   ;;  %v1698_v1 = vld [vmem:[%s252_s20 + $0x4] ss:$16 sps:$4 sm:$0xff]   ;;  %v1700_v2 = vld [vmem:[%s252_s20] ss:$16 sps:$4 sm:$0xff]   ;;  %vm313_vm0 = vcmask 130048   ;;  %v415_v22 = vlaneseq }
  0x58   : > { %1466 = vsyncadd (%p2194_p3), [#allocation6], 4294966272  ;;  %349 = vmatprep.mubr.bf16.mxu0 %v1493_v0  ;;  %390 = vmatprep.mubr.bf16.mxu1 %v1493_v0  ;;  %v1703_v3 = vld [vmem:[%s252_s20 + $0xc] ss:$16 sps:$4 sm:$0xff]   ;;  %v1705_v4 = vld [vmem:[%s252_s20 + $0x8] ss:$16 sps:$4 sm:$0xff]  }
  0x59   : > { %1327 = vset.pattern.permute.xlu0 %v1493_v0  ;;  %1328 = vset.pattern.permute.xlu1 %v1493_v0  ;;  %v292_v5 = vld [vmem:[%s2170_s1] sm:$0xf]  ;;  %s1494_s19 = smov 16   ;;  %s1495_s14 = smov 17   ;;  %v696_v15 = vld [vmem:[%s2172_s3 + $0x8] sm:$0xff]  ;;  %v423_v25 = vshrl.u32 %v415_v22, 7 }
  0x5a   : > { %317 = vmatprep.subr.bf16.mxu0 %v1698_v1  ;;  %358 = vmatprep.subr.bf16.mxu1 %v1703_v3  ;;  %s1496_s7 = smov 127   ;;  %s1497_s16 = smov 15   ;;  %v695_v14 = vld [vmem:[%s2172_s3] sm:$0xff]  ;;  %v1783_v26 = vand.u32 127, %v415_v22  ;;  %v1793_v31 = vld [vmem:[#allocation5 + $0x8] sm:$0xff]  ;;  %vm716_vm9 = vcmask 1043456  }
  0x5b   : > { %318 = vmatpush1.bf16.msra.mxu0 %v1700_v2  ;;  %359 = vmatpush1.bf16.msra.mxu1 %v1705_v4  ;;  %s1498_s13 = smov 113   ;;  %s1499_s12 = smov 1   ;;  %v1789_v29 = vsub.s32 1, %v423_v25  ;;  %v1791_v30 = vsub.s32 0, %v423_v25  ;;  %v1800_v34 = vsub.s32 3, %v423_v25  ;;  %v1804_v36 = vld [vmem:[#allocation5] sm:$0xff] }
  0x5c   : > { %s1500_s17 = smov 112   ;;  %s1501_s18 = smov 111   ;;  %vm450_vm1 = vcmp.lt.s32.totalorder %v1783_v26, 16  ;;  %vm417_vm2 = vcmp.lt.s32.totalorder %v1783_v26, 17  ;;  %v1812_v39 = vsub.s32 2, %v423_v25  ;;  %vm516_vm3 = vcmp.lt.s32.totalorder %v1783_v26, 1 }
  0x5d   : > { %v462_v35 = vrot.slane %v1793_v31, %v1789_v29  ;;  %v429_v37 = vrot.slane %v1793_v31, %v1791_v30  ;;  %v458_v42 = vrot.slane %v1804_v36, %v1789_v29  ;;  %vm483_vm4 = vcmp.lt.s32.totalorder %v1783_v26, 15  ;;  %s1212_s26 = sshll.u32 %s1682_s28, 6  ;;  %s1237_s8 = sshll.u32 %s1562_s25, 9 }
  0x5e   : > { %1217 = vmatmul.mubr.msk.bf16.vlgmr.msra.gmra.mrb[0].mxu0 %vm313_vm0, %v292_v5  ;;  %1218 = vmatmul.mubr.msk.bf16.vlgmr.msra.gmra.mrb[0].mxu1 %vm313_vm0, %v292_v5  ;;  %v528_v43 = vrot.slane %v1793_v31, %v1800_v34  ;;  %v425_v48 = vrot.slane %v1804_v36, %v1791_v30  ;;  %v495_v50 = vrot.slane %v1793_v31, %v1812_v39  ;;  %v1847_v57 = vsub.s32 5, %v423_v25  ;;  %s2097_s29 = scalar_lea.vmem [#allocation7], %s1212_s26  ;;  %p2195_p9 = scmp.ne.s32.totalorder %s2183_s9, 0 }
  0x5f   : > { %761 = vmatprep.mubr.bf16.mxu0 %v1493_v0  ;;  %804 = vmatprep.mubr.bf16.mxu1 %v1493_v0  ;;  %v524_v59 = vrot.slane %v1804_v36, %v1800_v34  ;;  %v491_v61 = vrot.slane %v1804_v36, %v1812_v39  ;;  %vm549_vm5 = vcmp.lt.s32.totalorder %v1783_v26, 127  ;;  %v1870_v22 = vsub.s32 7, %v423_v25  ;;  %s1119_s11 = sshll.u32 %s2097_s29, 4  ;;  %s2121_s11 = int_to_ptr.vmem [resolvable:$true] %s1119_s11 }
  0x60   : > { %vm582_vm6 = vcmp.lt.s32.totalorder %v1783_v26, 113  ;;  %vm615_vm7 = vcmp.lt.s32.totalorder %v1783_v26, 112  ;;  %vm648_vm8 = vcmp.lt.s32.totalorder %v1783_v26, 111  ;;  %vm712_vm10 = vcmask 588800  }
  0x61   : > { %vm959_vm11 = vcmask 7168  }
 0x131   : > { %v1717_v6 = vpop.f32.mrb[0].mxu0  ;;  %v1725_v8 = vpop.f32.mrb[0].mxu1 }
 0x132   : > { %442 = vrot.lane.b32.xlu1 %v1717_v6, %s1494_s19  ;;  %407 = vrot.lane.b32.xlu0 %v1717_v6, %s1495_s14  ;;  %v1723_v7 = vpop.f32.mrb[1].mxu0  ;;  %v1727_v10 = vpop.f32.mrb[1].mxu1 }
 0x133   : > { %v355_v9 = vpop.f32.mrb[2].mxu0  ;;  %v396_v12 = vpop.f32.mrb[2].mxu1 }
 0x134   : > { %v356_v11 = vpop.f32.mrb[3].mxu0  ;;  %v397_v13 = vpop.f32.mrb[3].mxu1  ;;  %v1860_v12 = vsub.s32 6, %v423_v25 }
 0x136   : > { %545 = vrot.lane.b32.xlu1 %v1725_v8, %s1496_s7  ;;  %475 = vrot.lane.b32.xlu0 %v1717_v6, %s1497_s16 }
 0x13a   : > { %574 = vrot.lane.b32.xlu1 %v1717_v6, %s1498_s13  ;;  %508 = vrot.lane.b32.xlu0 %v1717_v6, %s1499_s12 }
 0x13e   : > { %541 = vrot.lane.b32.xlu0 %v1717_v6, %s1496_s7  ;;  %444 = vrot.lane.b32.xlu1 %v1723_v7, %s1494_s19 }
 0x142   : > { %578 = vrot.lane.b32.xlu0 %v1725_v8, %s1498_s13  ;;  %448 = vrot.lane.b32.xlu1 %v1727_v10, %s1494_s19 }
 0x146   : > { %611 = vrot.lane.b32.xlu0 %v1725_v8, %s1500_s17  ;;  %477 = vrot.lane.b32.xlu1 %v1723_v7, %s1497_s16 }
 0x14a   : > { %510 = vrot.lane.b32.xlu1 %v1723_v7, %s1499_s12  ;;  %409 = vrot.lane.b32.xlu0 %v1723_v7, %s1495_s14 }
 0x14e   : > { %514 = vrot.lane.b32.xlu1 %v1727_v10, %s1499_s12  ;;  %413 = vrot.lane.b32.xlu0 %v1727_v10, %s1495_s14 }
 0x152   : > { %640 = vrot.lane.b32.xlu1 %v1717_v6, %s1501_s18  ;;  %481 = vrot.lane.b32.xlu0 %v1727_v10, %s1497_s16 }
 0x156   : > { %576 = vrot.lane.b32.xlu1 %v1723_v7, %s1498_s13  ;;  %543 = vrot.lane.b32.xlu0 %v1723_v7, %s1496_s7 }
 0x15a   : > { %609 = vrot.lane.b32.xlu1 %v1723_v7, %s1500_s17  ;;  %607 = vrot.lane.b32.xlu0 %v1717_v6, %s1500_s17 }
 0x15e   : > { %644 = vrot.lane.b32.xlu1 %v1725_v8, %s1501_s18  ;;  %642 = vrot.lane.b32.xlu0 %v1723_v7, %s1501_s18 }
 0x162   : > { %446 = vrot.lane.b32.xlu1 %v1725_v8, %s1494_s19  ;;  %411 = vrot.lane.b32.xlu0 %v1725_v8, %s1495_s14  ;;  %s2119_s14 = scalar_lea.hbm %s2175_s6, %s1237_s8 }
 0x166   : > { %512 = vrot.lane.b32.xlu1 %v1725_v8, %s1499_s12  ;;  %479 = vrot.lane.b32.xlu0 %v1725_v8, %s1497_s16 }
 0x16a   : > { %580 = vrot.lane.b32.xlu1 %v1727_v10, %s1498_s13  ;;  %547 = vrot.lane.b32.xlu0 %v1727_v10, %s1496_s7 }
 0x16e   : > { %646 = vrot.lane.b32.xlu1 %v1727_v10, %s1501_s18  ;;  %613 = vrot.lane.b32.xlu0 %v1727_v10, %s1500_s17 }
 0x172   : > { %699 = vperm.xlu0 %1327, %v695_v14   ;;  %704 = vperm.xlu1 %1328, %v696_v15   ;;  %v557_v15 = vrot.slane %v1804_v36, %v1847_v57 }
 0x1a4   : > { %v443_v16 = vpop.permute.xlu1 %442  ;;  %v408_v17 = vpop.permute.xlu0 %407 }
 0x1a8   : > { %v1775_v18 = vpop.permute.xlu1 %545  ;;  %v476_v19 = vpop.permute.xlu0 %475 }
 0x1ac   : > { %v1777_v20 = vpop.permute.xlu1 %574  ;;  %v509_v21 = vpop.permute.xlu0 %508 }
 0x1b0   : > { %v1779_v23 = vpop.permute.xlu0 %541  ;;  %v1781_v24 = vpop.permute.xlu1 %444 }
 0x1b1   : > { %v453_v38 = vsel %vm450_vm1, %v443_v16, %v1781_v24 }
 0x1b2   : > { %v472_v45 = vmul.f32 %v462_v35, %v453_v38 }
 0x1b4   : > { %v1785_v27 = vpop.permute.xlu0 %578  ;;  %v1787_v28 = vpop.permute.xlu1 %448 }
 0x1b5   : > { %v454_v49 = vsel %vm450_vm1, %v1787_v28, %v443_v16 }
 0x1b6   : > { %v471_v58 = vmul.f32 %v458_v42, %v454_v49  ;;  %v594_v42 = vrot.slane %v1793_v31, %v1860_v12 }
 0x1b8   : > { %v1796_v32 = vpop.permute.xlu0 %611  ;;  %v1798_v33 = vpop.permute.xlu1 %477 }
 0x1b9   : > { %v486_v51 = vsel %vm483_vm4, %v476_v19, %v1798_v33 }
 0x1ba   : > { %v505_v62 = vmul.f32 %v495_v50, %v486_v51 }
 0x1bc   : > { %v1815_v40 = vpop.permute.xlu1 %510  ;;  %v1817_v41 = vpop.permute.xlu0 %409 }
 0x1bd   : > { %v420_v44 = vsel %vm417_vm2, %v408_v17, %v1817_v41  ;;  %v519_v46 = vsel %vm516_vm3, %v509_v21, %v1815_v40 }
 0x1be   : > { %v439_v47 = vmul.f32 %v429_v37, %v420_v44  ;;  %v538_v55 = vmul.f32 %v528_v43, %v519_v46  ;;  %v627_v46 = vrot.slane %v1793_v31, %v1870_v22 }
 0x1c0   : > { %v1840_v52 = vpop.permute.xlu1 %514  ;;  %v1842_v53 = vpop.permute.xlu0 %413  ;;  %v674_v54 = vpack.c.bf16 %v472_v45, %v439_v47  ;;  %v678_v14 = vpack.c.bf16 %v538_v55, %v505_v62  ;;  %v623_v47 = vrot.slane %v1804_v36, %v1870_v22  ;;  %v1220_v62 = vld [vmem:[#allocation5 + $0x28] ss:$0 sm:$0xff] }
 0x1c1   : > { %v421_v56 = vsel %vm417_vm2, %v1842_v53, %v408_v17  ;;  %v520_v63 = vsel %vm516_vm3, %v1840_v52, %v509_v21  ;;  %v561_v21 = vrot.slane %v1793_v31, %v1847_v57 }
 0x1c2   : > { %v438_v60 = vmul.f32 %v425_v48, %v421_v56  ;;  %729 = vmatprep.subr.bf16.mxu0 %v674_v54  ;;  %v537_v16 = vmul.f32 %v524_v59, %v520_v63 }
 0x1c4   : > { %v673_v5 = vpack.c.bf16 %v471_v58, %v438_v60  ;;  %v1856_v9 = vpop.permute.xlu1 %640  ;;  %v1858_v11 = vpop.permute.xlu0 %481 }
 0x1c5   : > { %v487_v13 = vsel %vm483_vm4, %v1858_v11, %v476_v19  ;;  %v590_v19 = vrot.slane %v1804_v36, %v1860_v12 }
 0x1c6   : > { %v504_v17 = vmul.f32 %v491_v61, %v487_v13  ;;  %730 = vmatpush1.bf16.msra.mxu0 %v673_v5  ;;  %v1907_v61 = vld [vmem:[#allocation5 + $0x18] sm:$0xff] }
 0x1c7   : > { %731 = vmatprep.subr.bf16.mxu0 %v678_v14 }
 0x1c8   : > { %v677_v35 = vpack.c.bf16 %v537_v16, %v504_v17  ;;  %v577_v37 = vpop.permute.xlu1 %576  ;;  %v544_v38 = vpop.permute.xlu0 %543 }
 0x1c9   : > { %v551_v43 = vsel %vm549_vm5, %v544_v38, %v1775_v18  ;;  %v552_v25 = vsel %vm549_vm5, %v1779_v23, %v544_v38  ;;  %v584_v48 = vsel %vm582_vm6, %v577_v37, %v1785_v27  ;;  %v585_v49 = vsel %vm582_vm6, %v1777_v20, %v577_v37 }
 0x1ca   : > { %v570_v44 = vmul.f32 %v557_v15, %v552_v25  ;;  %v571_v45 = vmul.f32 %v561_v21, %v551_v43  ;;  %732 = vmatpush1.bf16.msra.mxu0 %v677_v35  ;;  %v603_v56 = vmul.f32 %v590_v19, %v585_v49  ;;  %v604_v58 = vmul.f32 %v594_v42, %v584_v48 }
 0x1cb   : > { %v470_v21 = vrot.slane %v1907_v61, %v1789_v29  ;;  %v437_v38 = vrot.slane %v1907_v61, %v1791_v30  ;;  %v536_v43 = vrot.slane %v1907_v61, %v1800_v34 }
 0x1cc   : > { %v681_v50 = vpack.c.bf16 %v570_v44, %v1717_v6  ;;  %v610_v51 = vpop.permute.xlu1 %609  ;;  %v1895_v54 = vpop.permute.xlu0 %607  ;;  %v682_v55 = vpack.c.bf16 %v571_v45, %v1723_v7  ;;  %v1905_v6 = vld [vmem:[#allocation5 + $0x10] sm:$0xff]  ;;  %v1219_v7 = vld [vmem:[#allocation5 + $0x20] ss:$0 sm:$0xff] }
 0x1cd   : > { %v617_v31 = vsel %vm615_vm7, %v610_v51, %v1796_v32  ;;  %v618_v36 = vsel %vm615_vm7, %v1895_v54, %v610_v51  ;;  %v466_v17 = vrot.slane %v1905_v6, %v1789_v29  ;;  %v433_v37 = vrot.slane %v1905_v6, %v1791_v30 }
 0x1ce   : > { %v637_v59 = vmul.f32 %v627_v46, %v617_v31  ;;  %v636_v60 = vmul.f32 %v623_v47, %v618_v36  ;;  %733 = vmatprep.subr.bf16.mxu0 %v682_v55  ;;  %v532_v42 = vrot.slane %v1905_v6, %v1800_v34  ;;  %v499_v46 = vrot.slane %v1905_v6, %v1812_v39 }
 0x1cf   : > { %734 = vmatpush1.bf16.msra.mxu0 %v681_v50  ;;  %v503_v47 = vrot.slane %v1907_v61, %v1812_v39 }
 0x1d0   : > { %v685_v63 = vpack.c.bf16 %v636_v60, %v603_v56  ;;  %v1909_v5 = vpop.permute.xlu1 %644  ;;  %v643_v13 = vpop.permute.xlu0 %642  ;;  %v686_v14 = vpack.c.bf16 %v637_v59, %v604_v58  ;;  %v569_v58 = vrot.slane %v1907_v61, %v1847_v57 }
 0x1d1   : > { %v650_v15 = vsel %vm648_vm8, %v643_v13, %v1909_v5  ;;  %v651_v16 = vsel %vm648_vm8, %v1856_v9, %v643_v13 }
 0x1d2   : > { %v669_v35 = vmul.f32 %v1219_v7, %v651_v16  ;;  %v670_v19 = vmul.f32 %v1220_v62, %v650_v15  ;;  %735 = vmatprep.subr.bf16.mxu0 %v686_v14 }
 0x1d3   : > { %736 = vmatpush1.bf16.msra.mxu0 %v685_v63 }
 0x1d4   : > { %v689_v25 = vpack.c.bf16 %v669_v35, %v669_v35  ;;  %v690_v44 = vpack.c.bf16 %v670_v19, %v670_v19  ;;  %v447_v29 = vpop.permute.xlu1 %446  ;;  %v412_v45 = vpop.permute.xlu0 %411  ;;  %v631_v19 = vrot.slane %v1905_v6, %v1870_v22 }
 0x1d5   : > { %v451_v30 = vsel %vm450_vm1, %v447_v29, %v1787_v28  ;;  %v452_v48 = vsel %vm450_vm1, %v1781_v24, %v447_v29  ;;  %v418_v34 = vsel %vm417_vm2, %v412_v45, %v1842_v53  ;;  %v419_v49 = vsel %vm417_vm2, %v1817_v41, %v412_v45  ;;  %v1950_v24 = vld [vmem:[%s2171_s2] sm:$0xff]  }
 0x1d6   : > { %v473_v50 = vmul.f32 %v466_v17, %v452_v48  ;;  %v474_v51 = vmul.f32 %v470_v21, %v451_v30  ;;  %v440_v55 = vmul.f32 %v433_v37, %v419_v49  ;;  %v441_v39 = vmul.f32 %v437_v38, %v418_v34  ;;  %1224 = vmatprep.subr.msk.bf16.mxu0 %vm716_vm9, %v690_v44  ;;  %v1221_v37 = vld [vmem:[#allocation5 + $0x30] ss:$0 sm:$0xff] }
 0x1d7   : > { %v718_v28 = vsel %vm716_vm9, %v689_v25, 0  ;;  %v565_v41 = vrot.slane %v1905_v6, %v1847_v57 }
 0x1d8   : > { %v675_v31 = vpack.c.bf16 %v473_v50, %v440_v55  ;;  %738 = vmatpush1.bf16.msra.mxu0 %v718_v28  ;;  %v513_v53 = vpop.permute.xlu1 %512  ;;  %v480_v36 = vpop.permute.xlu0 %479  ;;  %v676_v56 = vpack.c.bf16 %v474_v51, %v441_v39 }
 0x1d9   : > { %v517_v59 = vsel %vm516_vm3, %v513_v53, %v1840_v52  ;;  %v518_v60 = vsel %vm516_vm3, %v1815_v40, %v513_v53  ;;  %v484_v7 = vsel %vm483_vm4, %v480_v36, %v1858_v11  ;;  %v485_v62 = vsel %vm483_vm4, %v1798_v33, %v480_v36  ;;  %825 = vmatprep.subr.bf16.mxu0 %v1698_v1 }
 0x1da   : > { %v539_v63 = vmul.f32 %v532_v42, %v518_v60  ;;  %v540_v57 = vmul.f32 %v536_v43, %v517_v59  ;;  %v506_v13 = vmul.f32 %v499_v46, %v485_v62  ;;  %v507_v14 = vmul.f32 %v503_v47, %v484_v7  ;;  %772 = vmatprep.subr.bf16.mxu1 %v676_v56 }
 0x1db   : > { %1225 = vmatmul.mubr.msk.bf16.vlgmr.msra.gmra.mrb[4].mxu0 %vm712_vm10, %v1950_v24  ;;  %773 = vmatpush1.bf16.msra.mxu1 %v675_v31  ;;  %v598_v40 = vrot.slane %v1905_v6, %v1860_v12  ;;  %v602_v33 = vrot.slane %v1907_v61, %v1860_v12 }
 0x1dc   : > { %v679_v52 = vpack.c.bf16 %v539_v63, %v506_v13  ;;  %826 = vmatpush1.bf16.msra.mxu0 %v1700_v2  ;;  %v581_v11 = vpop.permute.xlu1 %580  ;;  %v548_v1 = vpop.permute.xlu0 %547  ;;  %v680_v15 = vpack.c.bf16 %v540_v57, %v507_v14  ;;  %857 = vmatprep.mubr.bf16.mxu0 %v1493_v0 }
 0x1dd   : > { %v583_v16 = vsel %vm582_vm6, %v1785_v27, %v581_v11  ;;  %v586_v17 = vsel %vm582_vm6, %v581_v11, %v1777_v20  ;;  %v550_v2 = vsel %vm549_vm5, %v1775_v18, %v548_v1  ;;  %v553_v12 = vsel %vm549_vm5, %v548_v1, %v1779_v23  ;;  %v1222_v20 = vld [vmem:[#allocation5 + $0x38] ss:$0 sm:$0xff]  ;;  %v1336_v18 = vld [vmem:[%s2173_s4] sm:$0xff]  }
 0x1de   : > { %v572_v21 = vmul.f32 %v565_v41, %v550_v2  ;;  %v573_v35 = vmul.f32 %v569_v58, %v553_v12  ;;  %774 = vmatprep.subr.bf16.mxu1 %v680_v15  ;;  %v635_v27 = vrot.slane %v1907_v61, %v1870_v22  ;;  %v605_v38 = vmul.f32 %v598_v40, %v583_v16 }
 0x1df   : > { %775 = vmatpush1.bf16.msra.mxu1 %v679_v52  ;;  %v606_v42 = vmul.f32 %v602_v33, %v586_v17 }
 0x1e0   : > { %v683_v23 = vpack.c.bf16 %v572_v21, %v1725_v8  ;;  %v647_v43 = vpop.permute.xlu1 %646  ;;  %v614_v25 = vpop.permute.xlu0 %613  ;;  %v684_v44 = vpack.c.bf16 %v573_v35, %v1727_v10 }
 0x1e1   : > { %v649_v6 = vsel %vm648_vm8, %v1909_v5, %v647_v43  ;;  %v652_v22 = vsel %vm648_vm8, %v647_v43, %v1856_v9  ;;  %v616_v61 = vsel %vm615_vm7, %v1796_v32, %v614_v25  ;;  %v619_v8 = vsel %vm615_vm7, %v614_v25, %v1895_v54 }
 0x1e2   : > { %v671_v29 = vmul.f32 %v1221_v37, %v649_v6  ;;  %v672_v45 = vmul.f32 %v1222_v20, %v652_v22  ;;  %v638_v46 = vmul.f32 %v631_v19, %v616_v61  ;;  %v639_v10 = vmul.f32 %v635_v27, %v619_v8  ;;  %776 = vmatprep.subr.bf16.mxu1 %v684_v44 }
 0x1e3   : > { %1229 = vmatmul.mubr.msk.bf16.vlgmr.msra.gmra.mrb[8].mxu0 %vm313_vm0, %v1336_v18  ;;  %777 = vmatpush1.bf16.msra.mxu1 %v683_v23 }
 0x1e4   : > { %v687_v5 = vpack.c.bf16 %v638_v46, %v605_v38  ;;  %v688_v47 = vpack.c.bf16 %v639_v10, %v606_v42  ;;  %v691_v30 = vpack.c.bf16 %v671_v29, %v671_v29  ;;  %v692_v9 = vpack.c.bf16 %v672_v45, %v672_v45 }
 0x1e6   : > { %778 = vmatprep.subr.bf16.mxu1 %v688_v47  ;;  %v724_v32 = vsel %vm716_vm9, %v691_v30, 0 }
 0x1e7   : > { %779 = vmatpush1.bf16.msra.mxu1 %v687_v5 }
 0x1e8   : > { %1226 = vmatprep.subr.msk.bf16.mxu1 %vm716_vm9, %v692_v9 }
 0x1eb   : > { %781 = vmatpush1.bf16.msra.mxu1 %v724_v32 }
 0x1ec   : > { %868 = vmatprep.subr.bf16.mxu1 %v1703_v3 }
 0x1ee   : > { %1227 = vmatmul.mubr.msk.bf16.vlgmr.msra.gmra.mrb[4].mxu1 %vm712_vm10, %v1950_v24 }
 0x1ef   : > { %869 = vmatpush1.bf16.msra.mxu1 %v1705_v4  ;;  %900 = vmatprep.mubr.bf16.mxu1 %v1493_v0 }
 0x1f1   : > { %v700_v26 = vpop.permute.xlu0 %699  ;;  %v705_v48 = vpop.permute.xlu1 %704 }
 0x1f6   : > { %1230 = vmatmul.mubr.msk.bf16.vlgmr.msra.gmra.mrb[8].mxu1 %vm313_vm0, %v1336_v18 }
 0x2ae   : > { %v763_v54 = vpop.f32.mrb[4].mxu0 }
 0x2af   : > { %v765_v34 = vpop.f32.mrb[5].mxu0  ;;  %v2019_v49 = vadd.f32 %v763_v54, %v700_v26 }
 0x2b0   : > { %v2021_v50 = vadd.f32 %v765_v34, %v700_v26  ;;  %v767_v51 = vpop.f32.mrb[6].mxu0 }
 0x2b1   : > { %v2023_v55 = vadd.f32 %v767_v51, %v705_v48  ;;  %v769_v3 = vpop.f32.mrb[7].mxu0 }
 0x2b2   : > { %v2025_v39 = vadd.f32 %v769_v3, %v705_v48  ;;  %v911_v4 = vadd.f32 %v2021_v50, %v2019_v49 }
 0x2b4   : > { %912 = vadd.xlane.f32.xlu1 %v911_v4  ;;  %v914_v0 = vadd.f32 %v2025_v39, %v2023_v55 }
 0x2b6   : > { %v2031_v28 = vpop.f32.mrb[8].mxu0  ;;  %915 = vadd.xlane.f32.xlu0 %v914_v0 }
 0x2b7   : > { %v2033_v24 = vpop.f32.mrb[9].mxu0 }
 0x2b8   : > { %v2035_v31 = vpop.f32.mrb[10].mxu0  ;;  %v920_v53 = vadd.f32 %v2033_v24, %v2031_v28 }
 0x2b9   : > { %v2039_v36 = vpop.f32.mrb[11].mxu0 }
 0x2ba   : > { %v923_v56 = vadd.f32 %v2039_v36, %v2035_v31  ;;  %921 = vadd.xlane.f32.xlu0 %v920_v53 }
 0x2bc   : > { %924 = vadd.xlane.f32.xlu1 %v923_v56 }
 0x2c1   : > { %v806_v41 = vpop.f32.mrb[4].mxu1 }
 0x2c2   : > { %v2043_v58 = vadd.f32 %v806_v41, %v700_v26  ;;  %v808_v59 = vpop.f32.mrb[5].mxu1 }
 0x2c3   : > { %v2045_v60 = vadd.f32 %v808_v59, %v700_v26  ;;  %v810_v7 = vpop.f32.mrb[6].mxu1 }
 0x2c4   : > { %v2047_v62 = vadd.f32 %v810_v7, %v705_v48  ;;  %v812_v63 = vpop.f32.mrb[7].mxu1 }
 0x2c5   : > { %v2049_v57 = vadd.f32 %v812_v63, %v705_v48  ;;  %v1005_v13 = vadd.f32 %v2045_v60, %v2043_v58 }
 0x2c7   : > { %1006 = vadd.xlane.f32.xlu0 %v1005_v13  ;;  %v1008_v14 = vadd.f32 %v2049_v57, %v2047_v62 }
 0x2c9   : > { %1009 = vadd.xlane.f32.xlu1 %v1008_v14  ;;  %v2055_v40 = vpop.f32.mrb[8].mxu1 }
 0x2ca   : > { %v2057_v52 = vpop.f32.mrb[9].mxu1 }
 0x2cb   : > { %v2059_v33 = vpop.f32.mrb[10].mxu1  ;;  %v1013_v15 = vadd.f32 %v2057_v52, %v2055_v40 }
 0x2cc   : > { %v2061_v11 = vpop.f32.mrb[11].mxu1 }
 0x2cd   : > { %v1016_v1 = vadd.f32 %v2061_v11, %v2059_v33  ;;  %1014 = vadd.xlane.f32.xlu0 %v1013_v15 }
 0x2cf   : > { %1017 = vadd.xlane.f32.xlu1 %v1016_v1 }
 0x341   : > { %v913_v16 = vpop.xlane.xlu1 %912 }
 0x342   : > { %v918_v2 = vmul.f32 0.00390625, %v913_v16 }
 0x343   : > { %v916_v17 = vpop.xlane.xlu0 %915 }
 0x344   : > { %v919_v12 = vmul.f32 0.00390625, %v916_v17 }
 0x346   : > { %v928_v21 = vmax.f32 %v918_v2, %v919_v12 }
 0x347   : > { %v922_v35 = vpop.xlane.xlu0 %921 }
 0x348   : > { %v929_v19 = vrot.slane %v928_v21, 4  ;;  %v926_v37 = vmul.f32 0.00390625, %v922_v35 }
 0x349   : > { %v925_v27 = vpop.xlane.xlu1 %924 }
 0x34a   : > { %v927_v20 = vmul.f32 0.00390625, %v925_v27  ;;  %v930_v18 = vmax.f32 %v928_v21, %v929_v19 }
 0x34c   : > { %v937_v38 = vmax.f32 %v926_v37, %v927_v20  ;;  %v931_v42 = vrot.slane %v930_v18, 2 }
 0x34e   : > { %v938_v23 = vrot.slane %v937_v38, 4  ;;  %v932_v43 = vmax.f32 %v930_v18, %v931_v42 }
 0x350   : > { %v939_v25 = vmax.f32 %v937_v38, %v938_v23  ;;  %v933_v44 = vrot.slane %v932_v43, 1 }
 0x352   : > { %v934_v6 = vmax.f32 %v932_v43, %v933_v44  ;;  %v940_v22 = vrot.slane %v939_v25, 2 }
 0x354   : > { %1238 = vpush %v934_v6  ;;  %v941_v61 = vmax.f32 %v939_v25, %v940_v22  ;;  %v1007_v63 = vpop.xlane.xlu0 %1006 }
 0x356   : > { %v942_v8 = vrot.slane %v941_v61, 1  ;;  %v1010_v13 = vpop.xlane.xlu1 %1009 }
 0x357   : > { %v1012_v15 = vmul.f32 0.00390625, %v1010_v13 }
 0x358   : > { %v943_v29 = vmax.f32 %v941_v61, %v942_v8 }
 0x35a   : > { %1240 = vpush %v943_v29  ;;  %v1015_v14 = vpop.xlane.xlu0 %1014 }
 0x35b   : > { %v1019_v16 = vmul.f32 0.00390625, %v1015_v14 }
 0x35c   : > { %v1018_v1 = vpop.xlane.xlu1 %1017 }
 0x35d   : > { %v1020_v17 = vmul.f32 0.00390625, %v1018_v1 }
 0x35f   : > { %v1030_v21 = vmax.f32 %v1019_v16, %v1020_v17 }
 0x361   : > { %v1031_v19 = vrot.slane %v1030_v21, 4 }
 0x385   : > { %s1239_s7 = spop %1238 }
 0x386   : > { %v936_v45 = vstv %s1239_s7  ;;  %s1106_s7 = scalar_lea.sflag [#allocation4], %s1682_s28 }
 0x38b   : > { %s1241_s16 = spop %1240 }
 0x38c   : > { %v945_v46 = vstv %s1241_s16  ;;  %s1415_s16 = scalar_lea.vmem %s2121_s11, 1024 }
 0x38d   : > { %v946_v10 = vmax.f32 %v936_v45, %v945_v46  ;;  %p1416_p8 = scmp.ne.s32.totalorder %s2121_s11, %s1415_s16 }
 0x38f   : > { %v947_v5 = vsub.f32 %v918_v2, %v946_v10  ;;  %v948_v47 = vsub.f32 %v919_v12, %v946_v10  ;;  %v953_v30 = vsub.f32 %v926_v37, %v946_v10  ;;  %v954_v9 = vsub.f32 %v927_v20, %v946_v10  ;;  %p1417_p10 = pnand %p1416_p8, %p2195_p9 }
 0x390   : > { %v1011_v2 = vmul.f32 0.00390625, %v1007_v63  ;;  %v1032_v37 = vmax.f32 %v1030_v21, %v1031_v19 }
 0x391   : > { %v949_v32 = vmul.f32 1.442695, %v947_v5  ;;  %v951_v26 = vmul.f32 1.442695, %v948_v47  ;;  %v955_v54 = vmul.f32 1.442695, %v953_v30  ;;  %p1418_p1 = pneg %p1417_p10 }
 0x392   : > { %v957_v48 = vmul.f32 1.442695, %v954_v9  ;;  %v1021_v12 = vmax.f32 %v1011_v2, %v1012_v15  ;;  %v1033_v25 = vrot.slane %v1032_v37, 2 }
 0x393   : > { %1337 = vpow2.f32 %v949_v32 }
 0x394   : > { %1339 = vpow2.f32 %v951_v26  ;;  %v1022_v35 = vrot.slane %v1021_v12, 4  ;;  %v1034_v29 = vmax.f32 %v1032_v37, %v1033_v25 }
 0x395   : > { %1341 = vpow2.f32 %v955_v54 }
 0x396   : > { %1343 = vpow2.f32 %v957_v48  ;;  %v1023_v27 = vmax.f32 %v1021_v12, %v1022_v35  ;;  %v1035_v30 = vrot.slane %v1034_v29, 1 }
 0x398   : > { %v1024_v42 = vrot.slane %v1023_v27, 2  ;;  %v1036_v26 = vmax.f32 %v1034_v29, %v1035_v30 }
 0x39a   : > { %v1025_v22 = vmax.f32 %v1023_v27, %v1024_v42 }
 0x39c   : > { %v1026_v10 = vrot.slane %v1025_v22, 1 }
 0x39d   : > { %v2067_v34 = vpop.eup %1337 }
 0x39e   : > { %v2069_v51 = vpop.eup %1339  ;;  %v960_v3 = vsel %vm959_vm11, %v2067_v34, 0.0  ;;  %v1027_v32 = vmax.f32 %v1025_v22, %v1026_v10 }
 0x39f   : > { %v2073_v4 = vpop.eup %1341  ;;  %v961_v0 = vsel %vm959_vm11, %v2069_v51, 0.0 }
 0x3a0   : > { %v2077_v53 = vpop.eup %1343  ;;  %v973_v56 = vsel %vm959_vm11, %v2073_v4, 0.0  ;;  %v962_v41 = vadd.f32 %v961_v0, %v960_v3 }
 0x3a1   : > { %v974_v59 = vsel %vm959_vm11, %v2077_v53, 0.0 }
 0x3a2   : > { %v975_v7 = vadd.f32 %v974_v59, %v973_v56  ;;  %963 = vadd.xlane.f32.xlu0 %v962_v41 }
 0x3a4   : > { %976 = vadd.xlane.f32.xlu1 %v975_v7 }
 0x42f   : > { %v964_v20 = vpop.xlane.xlu0 %963 }
 0x430   : > { %v965_v18 = vrot.slane %v964_v20, 4 }
 0x431   : > { %v977_v38 = vpop.xlane.xlu1 %976 }
 0x432   : > { %v966_v23 = vadd.f32 %v965_v18, %v964_v20  ;;  %v978_v43 = vrot.slane %v977_v38, 4 }
 0x434   : > { %v967_v44 = vrot.slane %v966_v23, 2  ;;  %v979_v6 = vadd.f32 %v978_v43, %v977_v38 }
 0x436   : > { %v980_v61 = vrot.slane %v979_v6, 2  ;;  %v968_v8 = vadd.f32 %v967_v44, %v966_v23 }
 0x438   : > { %v969_v45 = vrot.slane %v968_v8, 1  ;;  %v981_v46 = vadd.f32 %v980_v61, %v979_v6 }
 0x43a   : > { %v970_v5 = vadd.f32 %v969_v45, %v968_v8  ;;  %v982_v47 = vrot.slane %v981_v46, 1 }
 0x43c   : > { %1242 = vpush %v970_v5  ;;  %v983_v9 = vadd.f32 %v982_v47, %v981_v46 }
 0x43e   : > { %1244 = vpush %v983_v9 }
 0x43f   : > { %1246 = vpush %v1027_v32 }
 0x440   : > { %1248 = vpush %v1036_v26 }
 0x46d   : > { %s1243_s13 = spop %1242 }
 0x46e   : > { %v972_v54 = vstv %s1243_s13  ;;  %s1502_s13 = smov [#allocation7]  }
 0x46f   : > { %s1245_s12 = spop %1244 }
 0x470   : > { %v985_v48 = vstv %s1245_s12  ;;  %s1247_s17 = spop %1246  ;;  %s1419_s12 = sshll.u32 %s1502_s13, 4  ;;  %s1420_s12 = int_to_ptr.vmem [resolvable:$false] %s1419_s12 }
 0x471   : > { %v986_v3 = vadd.f32 %v985_v48, %v972_v54  ;;  %v1029_v0 = vstv %s1247_s17  ;;  %s1249_s18 = spop %1248  ;;  %s1421_s17 = scalar_lea.vmem %s1420_s12, 2048 }
 0x472   : > { %v1038_v56 = vstv %s1249_s18  ;;  %p1422_p4 = scmp.lt.s32.totalorder %s2121_s11, %s1420_s12  ;;  %p1423_p0 = scmp.lt.s32.totalorder %s1421_s17, %s1415_s16 }
 0x473   : > { %1345 = vrcp.f32 %v986_v3  ;;  %v1039_v41 = vmax.f32 %v1029_v0, %v1038_v56 }
 0x474   : > { %p1424_p5 = por %p1423_p0, %p1422_p4 }
 0x475   : > { %v1040_v59 = vsub.f32 %v1011_v2, %v1039_v41  ;;  %v1041_v7 = vsub.f32 %v1012_v15, %v1039_v41  ;;  %v1046_v63 = vsub.f32 %v1019_v16, %v1039_v41  ;;  %v1047_v13 = vsub.f32 %v1020_v17, %v1039_v41 }
 0x476   : > { %p1425_p11 = pnand %p1424_p5, %p1418_p1 }
 0x477   : > { %v1042_v14 = vmul.f32 1.442695, %v1040_v59  ;;  %v1044_v1 = vmul.f32 1.442695, %v1041_v7  ;;  %v1048_v12 = vmul.f32 1.442695, %v1046_v63 }
 0x478   : > { %v1050_v21 = vmul.f32 1.442695, %v1047_v13 }
 0x479   : > { %1347 = vpow2.f32 %v1042_v14 }
 0x47a   : > { %1349 = vpow2.f32 %v1044_v1 }
 0x47b   : > { %1351 = vpow2.f32 %v1048_v12 }
 0x47c   : > { %1353 = vpow2.f32 %v1050_v21 }
 0x47d   : > { %v1346_v35 = vpop.eup %1345 }
 0x47e   : > { %v989_v19 = vmul.f32 %v1346_v35, %v2067_v34  ;;  %v990_v27 = vmul.f32 %v1346_v35, %v2069_v51  ;;  %v995_v37 = vmul.f32 %v1346_v35, %v2073_v4  ;;  %v996_v15 = vmul.f32 %v1346_v35, %v2077_v53 }
 0x480   : > { %v991_v16 = vmul.f32 %v989_v19, %v2019_v49  ;;  %v992_v17 = vmul.f32 %v989_v19, %v2021_v50  ;;  %v993_v2 = vmul.f32 %v990_v27, %v2023_v55  ;;  %v994_v20 = vmul.f32 %v990_v27, %v2025_v39 }
 0x481   : > { %v997_v18 = vmul.f32 %v995_v37, %v2031_v28  ;;  %v998_v38 = vmul.f32 %v995_v37, %v2033_v24  ;;  %v999_v34 = vmul.f32 %v996_v15, %v2035_v31  ;;  %v1000_v51 = vmul.f32 %v996_v15, %v2039_v36 }
 0x483   : > { %v1348_v4 = vpop.eup %1347  ;;  %v1001_v42 = vadd.f32 %v997_v18, %v991_v16  ;;  %v1002_v53 = vadd.f32 %v998_v38, %v992_v17  ;;  %v1003_v23 = vadd.f32 %v999_v34, %v993_v2  ;;  %v1004_v43 = vadd.f32 %v1000_v51, %v994_v20 }
 0x484   : > { %v1350_v49 = vpop.eup %1349  ;;  %v1052_v50 = vsel %vm959_vm11, %v1348_v4, 0.0 }
 0x485   : > { %v1352_v25 = vpop.eup %1351  ;;  %1097 = vst [vmem:[%s2097_s29] sm:$0xff] %v1001_v42  ;;  %1098 = vst [vmem:[%s2097_s29 + $0x8] sm:$0xff] %v1002_v53  ;;  %v1053_v55 = vsel %vm959_vm11, %v1350_v49, 0.0 }
 0x486   : > { %1101 = vst [vmem:[%s2097_s29 + $0x20] sm:$0xff] %v1003_v23  ;;  %1102 = vst [vmem:[%s2097_s29 + $0x28] sm:$0xff] %v1004_v43  ;;  %v1354_v39 = vpop.eup %1353  ;;  %v1065_v28 = vsel %vm959_vm11, %v1352_v25, 0.0  ;;  %v1054_v24 = vadd.f32 %v1053_v55, %v1052_v50 }
 0x487   : > { %v1066_v31 = vsel %vm959_vm11, %v1354_v39, 0.0 }
 0x488   : > { %v1067_v36 = vadd.f32 %v1066_v31, %v1065_v28  ;;  %1055 = vadd.xlane.f32.xlu0 %v1054_v24 }
 0x48a   : > { %1068 = vadd.xlane.f32.xlu1 %v1067_v36 }
 0x515   : > { %v1056_v44 = vpop.xlane.xlu0 %1055 }
 0x516   : > { %v1057_v6 = vrot.slane %v1056_v44, 4 }
 0x517   : > { %v1069_v22 = vpop.xlane.xlu1 %1068 }
 0x518   : > { %v1070_v61 = vrot.slane %v1069_v22, 4  ;;  %v1058_v8 = vadd.f32 %v1057_v6, %v1056_v44 }
 0x51a   : > { %v1071_v29 = vadd.f32 %v1070_v61, %v1069_v22  ;;  %v1059_v45 = vrot.slane %v1058_v8, 2 }
 0x51c   : > { %v1072_v46 = vrot.slane %v1071_v29, 2  ;;  %v1060_v10 = vadd.f32 %v1059_v45, %v1058_v8 }
 0x51e   : > { %v1073_v5 = vadd.f32 %v1072_v46, %v1071_v29  ;;  %v1061_v47 = vrot.slane %v1060_v10, 1 }
 0x520   : > { %v1062_v30 = vadd.f32 %v1061_v47, %v1060_v10  ;;  %v1074_v9 = vrot.slane %v1073_v5, 1 }
 0x522   : > { %1250 = vpush %v1062_v30  ;;  %v1075_v32 = vadd.f32 %v1074_v9, %v1073_v5 }
 0x524   : > { %1252 = vpush %v1075_v32 }
 0x553   : > { %s1251_s15 = spop %1250 }
 0x554   : > { %v1064_v26 = vstv %s1251_s15 }
 0x555   : > { %s1253_s20 = spop %1252 }
 0x556   : > { %v1077_v54 = vstv %s1253_s20 }
 0x557   : > { %v1078_v48 = vadd.f32 %v1077_v54, %v1064_v26 }
 0x559   : > { %1355 = vrcp.f32 %v1078_v48 }
 0x563   : > { %v1356_v3 = vpop.eup %1355 }
 0x564   : > { %v1081_v0 = vmul.f32 %v1356_v3, %v1348_v4  ;;  %v1082_v56 = vmul.f32 %v1356_v3, %v1350_v49  ;;  %v1087_v41 = vmul.f32 %v1356_v3, %v1352_v25  ;;  %v1088_v59 = vmul.f32 %v1356_v3, %v1354_v39 }
 0x566   : > { %v1083_v7 = vmul.f32 %v1081_v0, %v2043_v58  ;;  %v1084_v63 = vmul.f32 %v1081_v0, %v2045_v60  ;;  %v1085_v13 = vmul.f32 %v1082_v56, %v2047_v62  ;;  %v1086_v14 = vmul.f32 %v1082_v56, %v2049_v57 }
 0x567   : > { %v1089_v1 = vmul.f32 %v1087_v41, %v2055_v40  ;;  %v1090_v12 = vmul.f32 %v1087_v41, %v2057_v52  ;;  %v1091_v21 = vmul.f32 %v1088_v59, %v2059_v33  ;;  %v1092_v35 = vmul.f32 %v1088_v59, %v2061_v11 }
 0x569   : > { %v1093_v58 = vadd.f32 %v1089_v1, %v1083_v7  ;;  %v1094_v60 = vadd.f32 %v1090_v12, %v1084_v63  ;;  %v1095_v62 = vadd.f32 %v1091_v21, %v1085_v13  ;;  %v1096_v57 = vadd.f32 %v1092_v35, %v1086_v14 }
 0x56b   : > { %1099 = vst [vmem:[%s2097_s29 + $0x10] sm:$0xff] %v1093_v58  ;;  %1100 = vst [vmem:[%s2097_s29 + $0x18] sm:$0xff] %v1094_v60 }
 0x56c   : > { %1103 = vst [vmem:[%s2097_s29 + $0x30] sm:$0xff] %v1095_v62  ;;  %1104 = vst [vmem:[%s2097_s29 + $0x38] sm:$0xff] %v1096_v57 }
 0x56d   : > { %1428 = shalt.err (!%p1425_p11)
}
 0x56e   : > { %s1429_s18 = scalar_lea.hbm %s2119_s14, 1024  ;;  %s1433_s15 = scalar_lea.hbm %s2175_s6, 2048 }
 0x56f   : > { %p1430_p13 = scmp.ne.s32.totalorder %s2119_s14, %s1429_s18  ;;  %p1434_p12 = scmp.lt.u32.totalorder %s2119_s14, %s2175_s6 }
 0x570   : > { %p1435_p7 = scmp.lt.u32.totalorder %s1433_s15, %s1429_s18  ;;  %p1437_p8 = scmp.lt.u32.totalorder %s1429_s18, %s2119_s14 }
 0x571   : > { %p1431_p2 = pnand %p1430_p13, %p2195_p9 }
 0x572   : > { %p1436_p3 = por %p1435_p7, %p1434_p12 }
 0x573   : > { %p1432_p6 = pneg %p1431_p2 }
 0x574   : > { %p1438_p10 = por %p1437_p8, %p1436_p3 }
 0x576   : > { %p1439_p1 = pnand %p1438_p10, %p1432_p6 }
 0x578   : > { %1442 = shalt.err (!%p1439_p1)
}
 0x579   : > { %s1503_s25 = smov 512   ;;  %s1504_s19 = smov 1024  }
 0x57a   : > { %s1505_s16 = smov 32  }
 0x57b   : > { %1260 = dma.vmem_to_hbm [thread:$0]  (%p2195_p9), %s2121_s11, 1024, %s2119_s14, %s1106_s7, %s1503_s25, %s1504_s19, %s1505_s16  }
 0x57c PF: > { %s1134_s13 = sand.u32 1, %s1473_s21   ;;  %p2196_p4 = scmp.ne.s32.totalorder %s2184_s10, 0 }
 0x57d   : > { %p2197_p0 = scmp.ge.s32.totalorder %s1485_s24, 2  ;;  %s1135_s12 = scalar_lea.sflag [#allocation4], %s1134_s13 }
 0x57f   : > { %p1271_p5 = pnand %p2197_p0, %p2196_p4 }
 0x581   : > { %1468 = dma.done.wait (!%p1271_p5), %s1135_s12, 1024  }
 0x582   : > { %1470 = vsyncadd (!%p1271_p5), %s1135_s12, 4294966272  ;;  %p20_p11 = scmp.ge.s32.totalorder %s1566_s27, 4   ;;  %s2198_s21 = smov %s1477_s22 }
 0x583   : > { %s2199_s22 = smov %s1481_s23  ;;  %s2200_s23 = smov %s1578_s30 }
 0x584   : > { %s2201_s24 = smov %s1566_s27  ;;  %22 = sbr.rel (!%p20_p11) target bundleno = 6 (0x6), region = 93 }
 0x58b   :  { %1140 = vsyncpa [#allocation3], 1 }
 0x58c   :  { %1142 = vsyncpa [#allocation3 + $0x1], 1 }
 0x58d   :  { %1143 = vsyncpa [#allocation6], 1 }
 0x58e   :  { %1144 = vsyncpa [#allocation4], 1 }
 0x58f   :  { %1146 = vsyncpa [#allocation4 + $0x1], 1 }

</bundles_post_ra>
